<compile_context>
chip_gen: v6e
topology: v6e:2x2x1
jax: 0.10.0
libtpu: 0.0.40
codegen_flags: <defaults>
</compile_context>

<pallas_src>
import functools
import math

import jax
import jax.numpy as jnp
from jax.experimental import pallas as pl
from jax.experimental.pallas import tpu as pltpu


def _pe_kernel(rowdata_ref, rot1_ref, rot2_ref, o_ref):
    """Emit one (TR, W) tile of the positional-encoding slab.

    Angle decomposition (all per-lane constants hoisted to the wrapper):
        angle(row, lane) = row * scale[lane] + offset[lane]
                         = b (segment-base angle, per lane) + d (= r * scale),
    with r in [0, SEG).  The kernel evaluates sin/cos only for the (1, W) base
    angle b and rotates it onto the SEG rows with the precomputed tables
        rot1[r, c] =  cos(d)  (even col)   |  -sin(d)  (odd col)
        rot2[r, c] =  sin(d)  (even col)   |   cos(d)  (odd col)
    so  out = sin(b) * rot1 + cos(b) * rot2  gives sin(angle) on even columns
    and an exact cos(angle) on odd columns — 2*W transcendentals per SEG*W
    elements instead of SEG*W, the rest is 2 mul + 1 add per element.
    """
    TR, W = o_ref.shape
    SEG = rot1_ref.shape[0]
    n_seg = TR // SEG
    i = pl.program_id(0)

    scale = rowdata_ref[0:1, :]            # (1, W)
    offset = rowdata_ref[1:2, :]           # (1, W)
    rot1 = rot1_ref[...]                   # (SEG, W), resident across grid steps
    rot2 = rot2_ref[...]

    if n_seg == 1:
        b = (i * TR).astype(jnp.float32) * scale + offset
        o_ref[...] = (jnp.sin(b) * rot1 + jnp.cos(b) * rot2).astype(o_ref.dtype)
    else:
        @pl.loop(0, n_seg)
        def _(g):
            row0 = pl.multiple_of(g * SEG, SEG)
            b = (i * TR + row0).astype(jnp.float32) * scale + offset
            o_ref[pl.ds(row0, SEG), :] = (
                jnp.sin(b) * rot1 + jnp.cos(b) * rot2).astype(o_ref.dtype)


def _choose_tile_rows(n_rows: int, width: int, itemsize: int) -> int:
    if n_rows <= 8:
        return n_rows
    # ~4 MiB per output tile (~8 MiB double-buffered): fits v7x's 64 MiB VMEM
    # and the v5e/v6e scoped defaults with headroom.
    target = max(8, (4 * 1024 * 1024) // (width * itemsize))
    # Force >= 2 grid steps for non-trivial slabs so the "parallel" grid axis
    # can shard across v7x's 2 TensorCores (no-op on single-TC v5e/v6e).
    half = -(-n_rows // 2)
    tr = min(target, half)
    if tr >= 128:
        tr = (tr // 128) * 128      # keep TR a multiple of the 128-row segment
    else:
        tr = max(8, (tr // 8) * 8)
    return tr


@functools.lru_cache(maxsize=None)
def _pe_table(seq_len: int, emb_dim: int, length: int, dtype_name: str) -> jax.Array:
    """Build pe[:, :length] once per static (seq_len, emb_dim, length, dtype)."""
    D, L = emb_dim, length
    dtype = jnp.dtype(dtype_name)
    assert L <= seq_len, "input sequence longer than the PE table"
    assert D % 2 == 0, "emb_dim must be even (as in the reference module)"

    # ----- lane-dense output width -----
    if D % 128 == 0:
        W, k = D, 1                                       # already lane-aligned
    else:
        lcm = D * 128 // math.gcd(D, 128)
        if lcm <= 512:
            W, k = lcm, lcm // D                          # fold k positions/row
        else:
            W, k = ((D + 127) // 128) * 128, 1            # pad lanes, slice later

    n_rows = -(-L // k)                                   # slab rows
    TR = _choose_tile_rows(n_rows, W, dtype.itemsize)
    SEG = TR if TR < 128 else 128
    grid = (pl.cdiv(n_rows, TR),)

    # ----- per-lane constants (built once; this function is cached) -----
    col = jnp.arange(W)
    src = col % D                                         # original embedding col
    freq = jnp.exp((src - (src % 2)).astype(jnp.float32)
                   * (-(math.log(10000.0) / D)))
    pos_off = (col // D).astype(jnp.float32)              # position offset per lane
    scale = freq * float(k)                               # angle step per slab row
    offset = pos_off * freq                               # intra-row position phase
    rowdata = jnp.stack([scale, offset], axis=0)          # (2, W)

    # Rotation tables for the SEG rows within a segment.
    d = jnp.arange(SEG, dtype=jnp.float32)[:, None] * scale[None, :]   # (SEG, W)
    odd = (src % 2 == 1)[None, :]
    cos_d, sin_d = jnp.cos(d), jnp.sin(d)
    rot1 = jnp.where(odd, -sin_d, cos_d)
    rot2 = jnp.where(odd, cos_d, sin_d)

    out = pl.pallas_call(
        _pe_kernel,
        out_shape=jax.ShapeDtypeStruct((n_rows, W), dtype),
        grid=grid,
        in_specs=[
            pl.BlockSpec((2, W), lambda i: (0, 0)),
            pl.BlockSpec((SEG, W), lambda i: (0, 0)),
            pl.BlockSpec((SEG, W), lambda i: (0, 0)),
        ],
        out_specs=pl.BlockSpec((TR, W), lambda i: (i, 0)),
        compiler_params=pltpu.CompilerParams(
            dimension_semantics=("parallel",),
            vmem_limit_bytes=32 * 1024 * 1024),           # v5e default is only 16 MiB
        cost_estimate=pl.CostEstimate(
            flops=3 * n_rows * W,
            transcendentals=2 * W * pl.cdiv(n_rows, SEG),
            bytes_accessed=n_rows * W * dtype.itemsize + (2 * SEG + 2) * W * 4),
    )(rowdata, rot1, rot2)

    if k > 1:
        pe = out.reshape(n_rows * k, D)[:L]               # undo lane folding
    else:
        pe = out[:L, :D]                                  # drop lane padding (if any)
    return pe[None]                                       # (1, L, D)


def trainable_positional_encoding(x: jax.Array, seq_len: int, emb_dim: int,
                                  out_dtype=jnp.float32) -> jax.Array:
    """Pallas equivalent of TrainablePositionalEncoding(seq_len, emb_dim)(x).

    Returns pe[:, :x.shape[1]] with shape (1, x.shape[1], emb_dim).  The table
    is cached across calls (like the PyTorch registered buffer), so the kernel
    runs only once per distinct (seq_len, emb_dim, L, dtype).
    """
    L = int(x.shape[1])
    return _pe_table(int(seq_len), int(emb_dim), L, jnp.dtype(out_dtype).name)


def _reference(seq_len: int, emb_dim: int, L: int) -> jnp.ndarray:
    # Pure-JAX reference mirroring the PyTorch __init__ buffer construction.
    position = jnp.arange(seq_len, dtype=jnp.float32)[:, None]
    exp_term = jnp.exp(
        jnp.arange(0, emb_dim, 2, dtype=jnp.float32) * -(math.log(10000.0) / emb_dim)
    )
    pe = jnp.zeros((seq_len, emb_dim), jnp.float32)
    pe = pe.at[:, 0::2].set(jnp.sin(position * exp_term))
    pe = pe.at[:, 1::2].set(jnp.cos(position * exp_term))
    return pe[None, :L, :]


if __name__ == "__main__":
    key = jax.random.PRNGKey(0)

    # Primary case (small shapes implied by the module): batch=2, seq=8, hidden=32.
    batch, seq_len, emb_dim, L = 2, 16, 32, 8
    x = jax.random.normal(key, (batch, L, emb_dim), dtype=jnp.float32)

    out = jax.block_until_ready(trainable_positional_encoding(x, seq_len, emb_dim))
    ref = _reference(seq_len, emb_dim, L)
    assert out.shape == (1, L, emb_dim), out.shape
    assert jnp.allclose(out, ref, atol=1e-5, rtol=1e-5), "mismatch vs reference"

    # Second forward with the same static shapes hits the cache (no new kernel).
    _ = trainable_positional_encoding(x + 1.0, seq_len, emb_dim)
    assert _pe_table.cache_info().hits >= 1, "PE table was not cached"

    # Exercise the generalized lane-dense folding (D=96 -> W=lcm(96,128)=384, k=4)
    # and the lane-padding path (D=80 -> W=128), both with multi-step grids.
    for (sl, d, l) in [(64, 96, 50), (32, 80, 20)]:
        xi = jnp.zeros((1, l, d), jnp.float32)
        oi = jax.block_until_ready(trainable_positional_encoding(xi, sl, d))
        ri = _reference(sl, d, l)
        assert oi.shape == (1, l, d), oi.shape
        assert jnp.allclose(oi, ri, atol=5e-5, rtol=1e-4), ("mismatch", sl, d, l)

    print("KERNEL_OK")
</pallas_src>

<mosaic_0001>
module attributes {stable_mosaic.version = 11 : i64} {
  func.func @_pe_kernel(%arg0: i32, %arg1: memref<2x128xf32, #tpu.memory_space<vmem>>, %arg2: memref<2x128xf32, #tpu.memory_space<vmem>>, %arg3: memref<2x128xf32, #tpu.memory_space<vmem>>, %arg4: memref<2x128xf32, #tpu.memory_space<vmem>>) attributes {dimension_semantics = [#tpu.dimension_semantics<parallel>], iteration_bounds = array<i64: 1>, scalar_prefetch = 0 : i64, scratch_operands = 0 : i64, tpu.core_type = #tpu.core_type<tc>, window_params = [{pipeline_mode = #tpu.pipeline_mode<synchronous>, transform_indices = @transform_0, window_bounds = array<i64: 2, 128>}, {pipeline_mode = #tpu.pipeline_mode<synchronous>, transform_indices = @transform_1, window_bounds = array<i64: 2, 128>}, {pipeline_mode = #tpu.pipeline_mode<synchronous>, transform_indices = @transform_2, window_bounds = array<i64: 2, 128>}, {transform_indices = @transform_3, window_bounds = array<i64: 2, 128>}]} {
    %c0 = arith.constant 0 : index
    %c0_0 = arith.constant 0 : index
    %0 = vector.load %arg1[%c0, %c0_0] : memref<2x128xf32, #tpu.memory_space<vmem>>, vector<1x128xf32>
    %c1 = arith.constant 1 : index
    %c0_1 = arith.constant 0 : index
    %1 = vector.load %arg1[%c1, %c0_1] : memref<2x128xf32, #tpu.memory_space<vmem>>, vector<1x128xf32>
    %c0_2 = arith.constant 0 : index
    %c0_3 = arith.constant 0 : index
    %2 = vector.load %arg2[%c0_2, %c0_3] : memref<2x128xf32, #tpu.memory_space<vmem>>, vector<2x128xf32>
    %c0_4 = arith.constant 0 : index
    %c0_5 = arith.constant 0 : index
    %3 = vector.load %arg3[%c0_4, %c0_5] : memref<2x128xf32, #tpu.memory_space<vmem>>, vector<2x128xf32>
    %c2_i32 = arith.constant 2 : i32
    %4 = arith.muli %arg0, %c2_i32 : i32
    %5 = arith.sitofp %4 : i32 to f32
    %6 = vector.broadcast %5 : f32 to vector<1x128xf32>
    %7 = arith.mulf %6, %0 : vector<1x128xf32>
    %8 = arith.addf %7, %1 : vector<1x128xf32>
    %9 = math.sin %8 : vector<1x128xf32>
    %10 = vector.broadcast %9 : vector<1x128xf32> to vector<2x128xf32>
    %11 = arith.mulf %10, %2 : vector<2x128xf32>
    %12 = math.cos %8 : vector<1x128xf32>
    %13 = vector.broadcast %12 : vector<1x128xf32> to vector<2x128xf32>
    %14 = arith.mulf %13, %3 : vector<2x128xf32>
    %15 = arith.addf %11, %14 : vector<2x128xf32>
    %c0_6 = arith.constant 0 : index
    %c0_7 = arith.constant 0 : index
    %16 = vector.load %arg4[%c0_6, %c0_7] : memref<2x128xf32, #tpu.memory_space<vmem>>, vector<2x128xf32>
    tpu.vector_store %arg4[%c0_6, %c0_7], %15 {strides = array<i32>} : memref<2x128xf32, #tpu.memory_space<vmem>>, vector<2x128xf32>,
    return
  }
  func.func @transform_0(%arg0: i32) -> (i32, i32) {
    %c0_i32 = arith.constant 0 : i32
    %c0_i32_0 = arith.constant 0 : i32
    %c0_i32_1 = arith.constant 0 : i32
    return %c0_i32, %c0_i32_0 : i32, i32
  }
  func.func @transform_1(%arg0: i32) -> (i32, i32) {
    %c0_i32 = arith.constant 0 : i32
    %c0_i32_0 = arith.constant 0 : i32
    %c0_i32_1 = arith.constant 0 : i32
    return %c0_i32, %c0_i32_0 : i32, i32
  }
  func.func @transform_2(%arg0: i32) -> (i32, i32) {
    %c0_i32 = arith.constant 0 : i32
    %c0_i32_0 = arith.constant 0 : i32
    %c0_i32_1 = arith.constant 0 : i32
    return %c0_i32, %c0_i32_0 : i32, i32
  }
  func.func @transform_3(%arg0: i32) -> (i32, i32) {
    %c0_i32 = arith.constant 0 : i32
    %c0_i32_0 = arith.constant 0 : i32
    return %arg0, %c0_i32 : i32, i32
  }
}

</mosaic_0001>

<bundles_post_ra>
// kernel: tpu_custom_call.1
= control target key start
LH: loop header
LB: loop body
LE: loop exit
PB: predicated region body
PF: predicated region fallthrough
CT: control target
= control target key end

     0   :  { %8 = vsyncpa [#allocation3], 0  ;;  %s436_s0 = inlined_call_operand.hbm [shape: f32[2,128], index: 0, kind: input, shape index: {}]   ;;  %s437_s1 = inlined_call_operand.hbm [shape: f32[2,128], index: 1, kind: input, shape index: {}]   ;;  %s438_s2 = inlined_call_operand.vmem [shape: f32[2,128], index: 2, kind: input, shape index: {}]   ;;  %s439_s3 = inlined_call_operand.hbm [shape: f32[2,128], index: 3, kind: output, shape index: {}]  }
   0x1   :  { %9 = vsyncpa [#allocation6], 0 }
   0x2   :  { %10 = vsyncpa [#allocation4], 0  ;;  %s374_s12 = smov [#allocation2]   ;;  %s375_s14 = smov [#allocation5]  }
   0x3   :  { %s17_s13 = sshll.u32 %s374_s12, 4  ;;  %s27_s15 = sshll.u32 %s375_s14, 4  ;;  %s18_s13 = int_to_ptr.vmem [resolvable:$true] %s17_s13  ;;  %s28_s15 = int_to_ptr.vmem [resolvable:$true] %s27_s15 }
   0x4   :  { %s316_s16 = scalar_lea.vmem %s18_s13, 32  ;;  %p321_p1 = scmp.lt.s32.totalorder %s18_s13, %s18_s13 }
   0x5   :  { %p317_p0 = scmp.ne.s32.totalorder %s18_s13, %s316_s16  ;;  %p322_p2 = scmp.lt.s32.totalorder %s316_s16, %s316_s16 }
   0x7   :  { %p323_p3 = por %p322_p2, %p321_p1 }
   0x9   :  { %p324_p4 = pnand %p323_p3, %p317_p0 }
   0xb   :  { %327 = shalt.err (!%p324_p4)
}
   0xc   :  { %20 = dma.hbm_to_vmem [thread:$0]  %s436_s0, 32, %s18_s13, [#allocation3]  }
   0xd   :  { %s336_s19 = scalar_lea.vmem %s28_s15, 32  ;;  %p341_p6 = scmp.lt.s32.totalorder %s28_s15, %s28_s15 }
   0xe   :  { %p337_p5 = scmp.ne.s32.totalorder %s28_s15, %s336_s19  ;;  %p342_p7 = scmp.lt.s32.totalorder %s336_s19, %s336_s19 }
  0x10   :  { %p343_p8 = por %p342_p7, %p341_p6 }
  0x12   :  { %p344_p9 = pnand %p343_p8, %p337_p5 }
  0x14   :  { %347 = shalt.err (!%p344_p9)
}
  0x15   :  { %30 = dma.hbm_to_vmem [thread:$0]  %s437_s1, 32, %s28_s15, [#allocation6]  }
  0x16   :  { %368 = dma.done.wait [#allocation3], 32  }
  0x17   :  { %369 = vsyncadd [#allocation3], 4294967264 }
  0x18   :  { %370 = dma.done.wait [#allocation6], 32  }
  0x19   :  { %371 = vsyncadd [#allocation6], 4294967264  ;;  %v39_v0 = vld [vmem:[#allocation2] sm:$0x1]  ;;  %v40_v1 = vld [vmem:[#allocation2 + $0x1] sm:$0x1] }
  0x1a   :  { %v46_v2 = vmul.f32 0.0, %v39_v0  ;;  %v376_v15 = vmov 683565275   ;;  %v377_v17 = vmov 2475754826   ;;  %s382_s22 = smov [#allocation7]  }
  0x1b   :  { %v378_v19 = vmov 2131351028   ;;  %v379_v21 = vmov 2102212464   ;;  %v380_v23 = vmov 920167782  }
  0x1c   :  { %v409_v3 = vadd.f32 %v46_v2, %v40_v1  ;;  %v381_v30 = vmov 1326507024   ;;  %s273_s23 = sshll.u32 %s382_s22, 4  ;;  %s274_s23 = int_to_ptr.vmem [resolvable:$true] %s273_s23 }
  0x1d   :  { %s348_s24 = scalar_lea.vmem %s274_s23, 32  ;;  %p353_p11 = scmp.lt.s32.totalorder %s274_s23, %s274_s23 }
  0x1e   :  { %v51_v4 = vand.u32 2139095040, %v409_v3  ;;  %v48_v6 = vand.u32 2147483647, %v409_v3  ;;  %vm50_vm7 = vcmp.lt.s32.totalorder %v409_v3, 0  ;;  %vm140_vm15 = vweird.f32 %v409_v3  ;;  %p349_p10 = scmp.ne.s32.totalorder %s274_s23, %s348_s24  ;;  %p354_p12 = scmp.lt.s32.totalorder %s348_s24, %s348_s24 }
  0x20   :  { %v52_v5 = vshrl.u32 %v51_v4, 23  ;;  %v55_v9 = vand.u32 8388607, %v48_v6  ;;  %vm49_vm8 = vcmp.le.f32.partialorder %v48_v6, 0.7853982  ;;  %p355_p13 = por %p354_p12, %p353_p11 }
  0x22   :  { %v283_v7 = vadd.s32 4294967169, %v52_v5  ;;  %v56_v12 = vor.u32 8388608, %v55_v9  ;;  %p356_p0 = pnand %p355_p13, %p349_p10 }
  0x24   :  { %v58_v8 = vadd.s32 1, %v283_v7  ;;  %v96_v32 = vshll.u32 %v56_v12, 8 }
  0x26   :  { %vm59_vm0 = vcmp.gt.s32.totalorder %v58_v8, 0 }
  0x27   :  { %v60_v10 = vsel %vm59_vm0, %v58_v8, 0 }
  0x28   :  { %v62_v11 = vand.u32 31, %v60_v10  ;;  %v61_v13 = vshrl.u32 %v60_v10, 5 }
  0x2a   :  { %v63_v14 = vsub.s32 32, %v62_v11  ;;  %v65_v16 = vshll.u32 %v376_v15, %v62_v11  ;;  %v68_v18 = vshll.u32 %v377_v17, %v62_v11  ;;  %v71_v20 = vshll.u32 %v378_v19, %v62_v11 }
  0x2b   :  { %v74_v22 = vshll.u32 %v379_v21, %v62_v11  ;;  %v77_v24 = vshll.u32 %v380_v23, %v62_v11  ;;  %vm80_vm1 = vcmp.lt.s32.totalorder %v61_v13, 1  ;;  %vm83_vm2 = vcmp.lt.s32.totalorder %v61_v13, 4 }
  0x2c   :  { %v64_v25 = vshrl.u32 %v376_v15, %v63_v14  ;;  %v66_v26 = vshrl.u32 %v377_v17, %v63_v14  ;;  %v69_v27 = vshrl.u32 %v378_v19, %v63_v14  ;;  %v72_v28 = vshrl.u32 %v379_v21, %v63_v14 }
  0x2d   :  { %v75_v29 = vshrl.u32 %v380_v23, %v63_v14  ;;  %v78_v31 = vshrl.u32 %v381_v30, %v63_v14  ;;  %vm81_vm3 = vcmp.lt.s32.totalorder %v61_v13, 2  ;;  %vm82_vm4 = vcmp.lt.s32.totalorder %v61_v13, 3 }
  0x2e   :  { %v67_v33 = vor.u32 %v66_v26, %v65_v16  ;;  %v70_v34 = vor.u32 %v69_v27, %v68_v18  ;;  %v73_v35 = vor.u32 %v72_v28, %v71_v20 }
  0x2f   :  { %v76_v36 = vor.u32 %v75_v29, %v74_v22  ;;  %v79_v37 = vor.u32 %v78_v31, %v77_v24  ;;  %v152_v24 = vlaneseq }
  0x30   :  { %v84_v38 = vsel %vm80_vm1, %v64_v25, %v67_v33  ;;  %v85_v39 = vsel %vm83_vm2, %v73_v35, 2102212464  ;;  %v88_v40 = vsel %vm80_vm1, %v67_v33, %v70_v34  ;;  %v92_v41 = vsel %vm80_vm1, %v70_v34, %v73_v35 }
  0x31   :  { %v86_v42 = vsel %vm82_vm4, %v70_v34, %v85_v39  ;;  %v89_v43 = vsel %vm83_vm2, %v76_v36, 920167782  ;;  %v93_v44 = vsel %vm83_vm2, %v79_v37, 1326507024  ;;  %v153_v27 = vshrl.u32 %v152_v24, 7 }
  0x32   :  { %v90_v45 = vsel %vm82_vm4, %v73_v35, %v89_v43  ;;  %v94_v46 = vsel %vm82_vm4, %v76_v36, %v93_v44  ;;  %v87_v47 = vsel %vm81_vm3, %v84_v38, %v86_v42  ;;  %v41_v38 = vld [vmem:[#allocation5] sm:$0x3]  ;;  %v42_v39 = vld [vmem:[%s438_s2] sm:$0x3] }
  0x33   :  { %v91_v48 = vsel %vm81_vm3, %v88_v40, %v90_v45  ;;  %v95_v49 = vsel %vm81_vm3, %v92_v41, %v94_v46  ;;  %v103_v54 = vmul.u32 %v96_v32, %v87_v47 }
  0x34   :  { %v415_v50 = vmul.u32.u64.low %v96_v32, %v95_v49  ;;  %v416_v51 = vmul.u32.u64.high %v96_v32, %v95_v49, %v415_v50  ;;  %v418_v52 = vmul.u32.u64.low %v96_v32, %v91_v48  ;;  %v419_v53 = vmul.u32.u64.high %v96_v32, %v91_v48, %v418_v52 }
  0x35   :  { %v154_v32 = vsub.s32 0, %v153_v27 }
  0x36   :  { %vm105_vm5 = vc.u32 %v416_v51, %v418_v52  ;;  %v106_v55 = vadd.s32 1, %v419_v53  ;;  %v104_v2 = vadd.s32 %v418_v52, %v416_v51 }
  0x38   :  { %v107_v56 = vsel %vm105_vm5, %v106_v55, %v419_v53 }
  0x39   :  { %v108_v57 = vadd.s32 %v107_v56, %v103_v54 }
  0x3b   :  { %v109_v58 = vadd.s32 536870912, %v108_v57 }
  0x3d   :  { %v110_v59 = vshrl.u32 %v109_v58, 30 }
  0x3f   :  { %v111_v60 = vshll.u32 %v110_v59, 30  ;;  %v134_v17 = vsub.s32 4, %v110_v59 }
  0x41   :  { %v112_v61 = vsub.s32 %v108_v57, %v111_v60  ;;  %v135_v20 = vsel %vm50_vm7, %v134_v17, %v110_v59 }
  0x42   :  { %v137_v22 = vsel %vm49_vm8, 0, %v135_v20 }
  0x43   :  { %v114_v62 = vsub.s32 0, %v112_v61  ;;  %v141_v23 = vadd.s32 3, %v137_v22  ;;  %v250_v26 = vand.u32 3, %v137_v22 }
  0x45   :  { %v284_v63 = vmin.u32 %v114_v62, %v112_v61  ;;  %v142_v25 = vand.u32 3, %v141_v23  ;;  %vm255_vm10 = vcmp.eq.s32.totalorder %v250_v26, 2  ;;  %vm252_vm12 = vcmp.eq.s32.totalorder %v250_v26, 0 }
  0x46   :  { %vm251_vm14 = vcmp.lt.s32.totalorder %v250_v26, 2 }
  0x47   :  { %v116_v0 = vclz %v284_v63  ;;  %vm147_vm9 = vcmp.eq.s32.totalorder %v142_v25, 2  ;;  %vm144_vm11 = vcmp.eq.s32.totalorder %v142_v25, 0  ;;  %vm143_vm13 = vcmp.lt.s32.totalorder %v142_v25, 2 }
  0x49   :  { %v285_v1 = vadd.s32 4294967294, %v116_v0 }
  0x4b   :  { %vm286_vm6 = vcmp.lt.s32.totalorder %v285_v1, 0 }
  0x4c   :  { %v119_v4 = vsel %vm286_vm6, 0, %v285_v1 }
  0x4d   :  { %v120_v5 = vsub.s32 32, %v119_v4  ;;  %v121_v7 = vshll.u32 %v112_v61, %v119_v4  ;;  %v124_v8 = vsub.s32 4294967266, %v119_v4 }
  0x4f   :  { %v122_v9 = vshrl.u32 %v104_v2, %v120_v5  ;;  %v125_v10 = vadd.s32 127, %v124_v8 }
  0x51   :  { %v123_v11 = vor.u32 %v122_v9, %v121_v7  ;;  %v126_v12 = vshll.u32 %v125_v10, 23 }
  0x53   :  { %v127_v13 = vor.u32 4788187, %v126_v12  ;;  %v130_v14 = vcvt.s32.f32 %v123_v11 }
  0x55   :  { %v128_v15 = vand.u32 2147483647, %v127_v13 }
  0x57   :  { %v131_v16 = vmul.f32 %v130_v14, %v128_v15 }
  0x59   :  { %v132_v18 = vxor.u32 2147483648, %v131_v16 }
  0x5b   :  { %v133_v19 = vsel %vm50_vm7, %v132_v18, %v131_v16 }
  0x5c   :  { %v136_v21 = vsel %vm49_vm8, %v409_v3, %v133_v19 }
  0x5d   :  { %304 = vcosq.f32 %v136_v21 }
  0x5e   :  { %306 = vsinq.f32 %v136_v21 }
  0x6a   :  { %v305_v28 = vpop.eup %304 }
  0x6b   :  { %v307_v29 = vpop.eup %306  ;;  %v148_v30 = vxor.u32 2147483648, %v305_v28 }
  0x6c   :  { %v145_v6 = vxor.u32 2147483648, %v307_v29 }
  0x6d   :  { %v149_v31 = vsel %vm147_vm9, %v148_v30, %v307_v29  ;;  %v257_v33 = vsel %vm255_vm10, %v148_v30, %v307_v29 }
  0x6e   :  { %v146_v34 = vsel %vm144_vm11, %v305_v28, %v145_v6  ;;  %v254_v35 = vsel %vm252_vm12, %v305_v28, %v145_v6 }
  0x6f   :  { %v150_v36 = vsel %vm143_vm13, %v146_v34, %v149_v31  ;;  %v258_v37 = vsel %vm251_vm14, %v254_v35, %v257_v33 }
  0x70   :  { %v151_v40 = vsel %vm140_vm15, nan, %v150_v36  ;;  %v259_v41 = vsel %vm140_vm15, nan, %v258_v37 }
  0x71   :  { %v155_v42 = vrot.slane %v151_v40, %v154_v32  ;;  %v263_v43 = vrot.slane %v259_v41, %v154_v32 }
  0x73   :  { %v156_v44 = vmul.f32 %v155_v42, %v41_v38  ;;  %v264_v3 = vmul.f32 %v263_v43, %v42_v39 }
  0x75   :  { %v265_v45 = vadd.f32 %v264_v3, %v156_v44 }
  0x77   :  { %266 = vst [vmem:[#allocation7] sm:$0x3] %v265_v45 }
  0x78   :  { %359 = shalt.err (!%p356_p0)
}
  0x79   :  { %276 = dma.vmem_to_hbm [thread:$0]  %s274_s23, 32, %s439_s3, [#allocation4]  }
  0x7a   :  { %372 = dma.done.wait [#allocation4], 32  }
  0x7b   :  { %373 = vsyncadd [#allocation4], 4294967264 }
  0x7c   :  { %280 = vsyncpa [#allocation3], 1 }
  0x7d   :  { %281 = vsyncpa [#allocation6], 1 }
  0x7e   :  { %282 = vsyncpa [#allocation4], 1 }

</bundles_post_ra>
